<compile_context>
chip_gen: v6e
topology: v6e:2x2x1
jax: 0.10.0
libtpu: 0.0.40
codegen_flags: <defaults>
</compile_context>

<pallas_src>
import math

import jax
import jax.numpy as jnp
from jax.experimental import pallas as pl
from jax.experimental.pallas import tpu as pltpu


# ---------------------------------------------------------------------------
# Pallas kernel: per block of TG groups -> two fused matmuls
# ---------------------------------------------------------------------------
def future_encoder_kernel(x_ref, w1_ref, b1_ref, w2_ref, b2_ref, out_ref):
    # layer 1: block-diagonal over T (+ identity block passing the type one-hot)
    h = jnp.dot(x_ref[...], w1_ref[...], preferred_element_type=jnp.float32)
    h = jnp.maximum(h + b1_ref[...], 0.0)                       # (tg, T*64+4) f32
    # layer 2: row-stacked W2/T realizes the T-mean; stacked emb rows realize the
    # type-embedding add (one-hot columns of h select the right table row).
    y = jnp.dot(h.astype(jnp.bfloat16), w2_ref[...],
                preferred_element_type=jnp.float32) + b2_ref[...]  # (tg, 256)
    out_ref[...] = y.astype(out_ref.dtype)


def future_encoder_pallas(x_aug, w1_aug, b1_aug, w2_aug, b2, *, tg, out_dtype):
    """x_aug: [G_pad, T*8+4] bf16 -> [G_pad, 256] out_dtype."""
    g, k1 = x_aug.shape
    n1 = w1_aug.shape[1]
    assert g % tg == 0 and w1_aug.shape[0] == k1 and w2_aug.shape == (n1, 256)
    grid = (g // tg,)
    return pl.pallas_call(
        future_encoder_kernel,
        out_shape=jax.ShapeDtypeStruct((g, 256), out_dtype),
        grid_spec=pltpu.PrefetchScalarGridSpec(
            num_scalar_prefetch=0,
            grid=grid,
            in_specs=[
                pl.BlockSpec((tg, k1), lambda i: (i, 0)),     # x (+ one-hot), bf16
                pl.BlockSpec((k1, n1), lambda i: (0, 0)),     # block-diag W1 (+I4), bf16
                pl.BlockSpec((1, n1), lambda i: (0, 0)),      # tiled b1 (+ zeros), f32
                pl.BlockSpec((n1, 256), lambda i: (0, 0)),    # stacked W2/T (+ emb), bf16
                pl.BlockSpec((1, 256), lambda i: (0, 0)),     # b2, f32
            ],
            out_specs=pl.BlockSpec((tg, 256), lambda i: (i, 0)),
        ),
        compiler_params=pltpu.CompilerParams(
            dimension_semantics=("parallel",)),
    )(x_aug, w1_aug, b1_aug, w2_aug, b2)


# ---------------------------------------------------------------------------
# Glue: feature construction (state_process) + augmented-weight prep in JAX
# ---------------------------------------------------------------------------
def state_process(trajs, current_states):
    # trajs: [B, N, M, T, 2], current_states: [B, N, D] (D >= 9)
    B, N, M, T, _ = trajs.shape
    D = current_states.shape[-1]
    cs = jnp.broadcast_to(current_states[:, :, None, :], (B, N, M, D))
    xy0 = cs[:, :, :, None, :2]                                   # [B,N,M,1,2]
    xy = jnp.concatenate([xy0, trajs], axis=-2)                   # [B,N,M,T+1,2]
    dxy = jnp.diff(xy, axis=-2)                                   # [B,N,M,T,2]
    v = dxy / 0.1
    theta = jnp.arctan2(dxy[..., 1],
                        jnp.maximum(dxy[..., 0], 0.001))[..., None]  # clamp(min=0.001)
    size = jnp.broadcast_to(cs[:, :, :, None, 5:8], (B, N, M, T, 3))
    feats = jnp.concatenate([trajs, theta, v, size], axis=-1)     # [B,N,M,T,8]
    return feats


def _round_up(x, m):
    return ((x + m - 1) // m) * m


def _choose_tg(g, tg_max=2048, min_steps=4):
    """Group-tile: multiple of 16 (bf16 packing), <= tg_max, and small enough that
    the grid has several steps (megacore sharding on v7x, pipeline overlap)."""
    g16 = _round_up(max(g, 1), 16)
    tg = min(tg_max, _round_up(-(-g16 // min_steps), 16))
    return max(tg, 16)


def _augment_params(params, T):
    """Build the fused weights once: block-diag W1 (+I4), tiled b1, stacked W2/T (+emb)."""
    w1, b1, w2, b2, emb = (params["w1"], params["b1"], params["w2"],
                           params["b2"], params["emb"])
    w1_aug = jax.scipy.linalg.block_diag(*([w1] * T),
                                         jnp.eye(4, dtype=w1.dtype))   # (T*8+4, T*64+4)
    b1_aug = jnp.concatenate([jnp.tile(b1, (1, T)),
                              jnp.zeros((1, 4), b1.dtype)], axis=1)    # (1, T*64+4)
    w2_aug = jnp.concatenate([jnp.tile(w2, (T, 1)) / T, emb], axis=0)  # (T*64+4, 256)
    return (w1_aug.astype(jnp.bfloat16), b1_aug.astype(jnp.float32),
            w2_aug.astype(jnp.bfloat16), b2.astype(jnp.float32))


def future_encoder_forward(trajs, current_states, params, *,
                           tg_max=2048, out_dtype=jnp.float32):
    B, N, M, T, _ = trajs.shape
    feats = state_process(trajs, current_states)                  # [B,N,M,T,8] f32
    G = B * N * M

    tg = _choose_tg(G, tg_max)
    G_pad = _round_up(G, tg)

    # Lane-dense activation: [G, T*8] bf16 (free reshape, no transpose), with the
    # per-group type one-hot appended so the whole thing is one HBM stream.
    x = feats.reshape(G, T * 8).astype(jnp.bfloat16)
    type_idx = current_states[:, :, 8].astype(jnp.int32)          # [B,N]
    type_idx = jnp.broadcast_to(type_idx[:, :, None], (B, N, M)).reshape(G)
    onehot = jax.nn.one_hot(type_idx, 4, dtype=jnp.bfloat16)      # [G,4]
    x_aug = jnp.concatenate([x, onehot], axis=-1)                 # [G, T*8+4]
    if G_pad != G:
        x_aug = jnp.pad(x_aug, ((0, G_pad - G), (0, 0)))

    # In a real model these fused weights would be precomputed once, not per call.
    w1_aug, b1_aug, w2_aug, b2 = _augment_params(params, T)

    out = future_encoder_pallas(x_aug, w1_aug, b1_aug, w2_aug, b2,
                                tg=tg, out_dtype=out_dtype)
    return out[:G].reshape(B, N, M, 256)


def future_encoder_reference(trajs, current_states, params):
    # pure f32 reference, original op order (matmul first, then mean, then emb add)
    feats = state_process(trajs, current_states)
    h = jnp.maximum(feats @ params["w1"] + params["b1"][0], 0.0)
    y = h @ params["w2"] + params["b2"][0]
    out = jnp.mean(y, axis=-2)                                    # [B,N,M,256]
    type_idx = current_states[:, :, 8].astype(jnp.int32)
    type_vec = params["emb"][type_idx][:, :, None, :]             # [B,N,1,256]
    return out + type_vec


# ---------------------------------------------------------------------------
# Deterministic parameter init (mimics nn.Linear / nn.Embedding defaults)
# ---------------------------------------------------------------------------
def init_params(key):
    k1, k2, k3, k4, k5 = jax.random.split(key, 5)
    lim1 = 1.0 / math.sqrt(8)
    lim2 = 1.0 / math.sqrt(64)
    w1 = jax.random.uniform(k1, (8, 64), jnp.float32, -lim1, lim1)
    b1 = jax.random.uniform(k2, (1, 64), jnp.float32, -lim1, lim1)
    w2 = jax.random.uniform(k3, (64, 256), jnp.float32, -lim2, lim2)
    b2 = jax.random.uniform(k4, (1, 256), jnp.float32, -lim2, lim2)
    emb = jax.random.normal(k5, (4, 256), jnp.float32)
    emb = emb.at[0].set(0.0)                                      # padding_idx=0
    return {"w1": w1, "b1": b1, "w2": w2, "b2": b2, "emb": emb}


if __name__ == "__main__":
    key = jax.random.PRNGKey(0)
    kp, kt, kc, ki = jax.random.split(key, 4)

    B, N, M, T = 2, 3, 4, 8          # batch, agents, modes, future timesteps
    D = 10                           # current-state feature dim (>= 9)

    params = init_params(kp)

    trajs = jax.random.normal(kt, (B, N, M, T, 2), jnp.float32)
    cs = jax.random.normal(kc, (B, N, D), jnp.float32)
    type_ids = jax.random.randint(ki, (B, N), 0, 4).astype(jnp.float32)
    current_states = cs.at[:, :, 8].set(type_ids)

    out = future_encoder_forward(trajs, current_states, params)
    out = jax.block_until_ready(out)

    ref = future_encoder_reference(trajs, current_states, params)
    assert out.shape == (B, N, M, 256)
    # bf16 matmuls (two rounding steps) vs f32 reference -> relaxed tolerance.
    # TODO(synk): keep layer-1 input f32 (or center coordinates) if map-frame
    # magnitudes make bf16 activations too coarse in production.
    assert jnp.allclose(out, ref, atol=1e-1, rtol=5e-2), "mismatch vs JAX reference"

    print("KERNEL_OK")
</pallas_src>

<mosaic_0001>
module attributes {stable_mosaic.version = 11 : i64} {
  func.func @future_encoder_kernel(%arg0: i32, %arg1: memref<16x68xbf16, #tpu.memory_space<vmem>>, %arg2: memref<68x516xbf16, #tpu.memory_space<vmem>>, %arg3: memref<1x516xf32, #tpu.memory_space<vmem>>, %arg4: memref<516x256xbf16, #tpu.memory_space<vmem>>, %arg5: memref<1x256xf32, #tpu.memory_space<vmem>>, %arg6: memref<16x256xf32, #tpu.memory_space<vmem>>) attributes {dimension_semantics = [#tpu.dimension_semantics<parallel>], iteration_bounds = array<i64: 2>, scalar_prefetch = 0 : i64, scratch_operands = 0 : i64, tpu.core_type = #tpu.core_type<tc>, window_params = [{transform_indices = @transform_0, window_bounds = array<i64: 16, 68>}, {pipeline_mode = #tpu.pipeline_mode<synchronous>, transform_indices = @transform_1, window_bounds = array<i64: 68, 516>}, {pipeline_mode = #tpu.pipeline_mode<synchronous>, transform_indices = @transform_2, window_bounds = array<i64: 1, 516>}, {pipeline_mode = #tpu.pipeline_mode<synchronous>, transform_indices = @transform_3, window_bounds = array<i64: 516, 256>}, {pipeline_mode = #tpu.pipeline_mode<synchronous>, transform_indices = @transform_4, window_bounds = array<i64: 1, 256>}, {transform_indices = @transform_5, window_bounds = array<i64: 16, 256>}]} {
    %c0 = arith.constant 0 : index
    %c0_0 = arith.constant 0 : index
    %0 = vector.load %arg1[%c0, %c0_0] : memref<16x68xbf16, #tpu.memory_space<vmem>>, vector<16x68xbf16>
    %c0_1 = arith.constant 0 : index
    %c0_2 = arith.constant 0 : index
    %1 = vector.load %arg2[%c0_1, %c0_2] : memref<68x516xbf16, #tpu.memory_space<vmem>>, vector<68x516xbf16>
    %cst = arith.constant dense<0.000000e+00> : vector<16x516xf32>
    %2 = tpu.matmul %0, %1, %cst {dimension_numbers = #tpu.dot_dimension_numbers<[1], [0], [0], [1], [0, 0, 1, 1], [], []>} : vector<16x68xbf16>, vector<68x516xbf16>, vector<16x516xf32> -> vector<16x516xf32>
    %c0_3 = arith.constant 0 : index
    %c0_4 = arith.constant 0 : index
    %3 = vector.load %arg3[%c0_3, %c0_4] : memref<1x516xf32, #tpu.memory_space<vmem>>, vector<1x516xf32>
    %4 = vector.broadcast %3 : vector<1x516xf32> to vector<16x516xf32>
    %5 = arith.addf %2, %4 : vector<16x516xf32>
    %cst_5 = arith.constant 0.000000e+00 : f32
    %6 = vector.broadcast %cst_5 : f32 to vector<16x516xf32>
    %7 = arith.maximumf %5, %6 : vector<16x516xf32>
    %8 = arith.truncf %7 : vector<16x516xf32> to vector<16x516xbf16>
    %c0_6 = arith.constant 0 : index
    %c0_7 = arith.constant 0 : index
    %9 = vector.load %arg4[%c0_6, %c0_7] : memref<516x256xbf16, #tpu.memory_space<vmem>>, vector<516x256xbf16>
    %cst_8 = arith.constant dense<0.000000e+00> : vector<16x256xf32>
    %10 = tpu.matmul %8, %9, %cst_8 {dimension_numbers = #tpu.dot_dimension_numbers<[1], [0], [0], [1], [0, 0, 1, 1], [], []>} : vector<16x516xbf16>, vector<516x256xbf16>, vector<16x256xf32> -> vector<16x256xf32>
    %c0_9 = arith.constant 0 : index
    %c0_10 = arith.constant 0 : index
    %11 = vector.load %arg5[%c0_9, %c0_10] : memref<1x256xf32, #tpu.memory_space<vmem>>, vector<1x256xf32>
    %12 = vector.broadcast %11 : vector<1x256xf32> to vector<16x256xf32>
    %13 = arith.addf %10, %12 : vector<16x256xf32>
    %c0_11 = arith.constant 0 : index
    %c0_12 = arith.constant 0 : index
    %14 = vector.load %arg6[%c0_11, %c0_12] : memref<16x256xf32, #tpu.memory_space<vmem>>, vector<16x256xf32>
    tpu.vector_store %arg6[%c0_11, %c0_12], %13 {strides = array<i32>} : memref<16x256xf32, #tpu.memory_space<vmem>>, vector<16x256xf32>,
    return
  }
  func.func @transform_0(%arg0: i32) -> (i32, i32) {
    %c0_i32 = arith.constant 0 : i32
    %c0_i32_0 = arith.constant 0 : i32
    return %arg0, %c0_i32 : i32, i32
  }
  func.func @transform_1(%arg0: i32) -> (i32, i32) {
    %c0_i32 = arith.constant 0 : i32
    %c0_i32_0 = arith.constant 0 : i32
    %c0_i32_1 = arith.constant 0 : i32
    return %c0_i32, %c0_i32_0 : i32, i32
  }
  func.func @transform_2(%arg0: i32) -> (i32, i32) {
    %c0_i32 = arith.constant 0 : i32
    %c0_i32_0 = arith.constant 0 : i32
    %c0_i32_1 = arith.constant 0 : i32
    return %c0_i32, %c0_i32_0 : i32, i32
  }
  func.func @transform_3(%arg0: i32) -> (i32, i32) {
    %c0_i32 = arith.constant 0 : i32
    %c0_i32_0 = arith.constant 0 : i32
    %c0_i32_1 = arith.constant 0 : i32
    return %c0_i32, %c0_i32_0 : i32, i32
  }
  func.func @transform_4(%arg0: i32) -> (i32, i32) {
    %c0_i32 = arith.constant 0 : i32
    %c0_i32_0 = arith.constant 0 : i32
    %c0_i32_1 = arith.constant 0 : i32
    return %c0_i32, %c0_i32_0 : i32, i32
  }
  func.func @transform_5(%arg0: i32) -> (i32, i32) {
    %c0_i32 = arith.constant 0 : i32
    %c0_i32_0 = arith.constant 0 : i32
    return %arg0, %c0_i32 : i32, i32
  }
}

</mosaic_0001>

<bundles_post_ra>
// kernel: tpu_custom_call.1
= control target key start
LH: loop header
LB: loop body
LE: loop exit
PB: predicated region body
PF: predicated region fallthrough
CT: control target
= control target key end

     0   :  { %10 = vsyncpa [#allocation3], 0  ;;  %s2106_s0 = inlined_call_operand.hbm [shape: bf16[32,68], index: 0, kind: input, shape index: {}]   ;;  %s2107_s1 = inlined_call_operand.hbm [shape: bf16[68,516], index: 1, kind: input, shape index: {}]   ;;  %s2108_s2 = inlined_call_operand.hbm [shape: f32[1,516], index: 2, kind: input, shape index: {}]   ;;  %s2109_s3 = inlined_call_operand.hbm [shape: bf16[516,256], index: 3, kind: input, shape index: {}]   ;;  %s2110_s4 = inlined_call_operand.vmem [shape: f32[1,256], index: 4, kind: input, shape index: {}]   ;;  %s2111_s5 = inlined_call_operand.hbm [shape: f32[32,256], index: 5, kind: output, shape index: {}]  }
   0x1   :  { %12 = vsyncpa [#allocation3 + $0x1], 0 }
   0x2   :  { %13 = vsyncpa [#allocation6], 0 }
   0x3   :  { %14 = vsyncpa [#allocation9], 0 }
   0x4   :  { %15 = vsyncpa [#allocation4], 0 }
   0x5   :  { %17 = vsyncpa [#allocation4 + $0x1], 0  ;;  %s1879_s18 = smov 0   ;;  %s1881_s19 = smov 0  }
   0x6   :  { %s1883_s20 = smov 0   ;;  %s1885_s21 = smov 0  }
   0x7 LB: > { %s1900_s22 = sadd.s32 4294967295, %s1831_s21   ;;  %s1290_s23 = sadd.s32 4294967294, %s1831_s21   ;;  %s1831_s21 = sphi %s1885_s21, %s2135_s21   ;;  %s1827_s20 = sphi %s1883_s20, %s2134_s20   ;;  %s1823_s19 = sphi %s1881_s19, %s2133_s19   ;;  %s1819_s18 = sphi %s1879_s18, %s2132_s18  }
   0x8   : > { %p43_p0 = scmp.ne.s32.totalorder %s1823_s19, %s1819_s18  ;;  %p2112_p1 = scmp.eq.s32.totalorder %s1900_s22, 0 }
   0x9   : > { %p157_p3 = scmp.eq.s32.totalorder %s1290_s23, 1  ;;  %p1291_p5 = scmp.ge.s32.totalorder %s1831_s21, 1 }
   0xa   : > { %p1909_p4 = por %p2112_p1, %p43_p0  ;;  %p164_p7 = scmp.lt.s32.totalorder %s1831_s21, 3 }
   0xb   : > { %p1914_p6 = por %p157_p3, %p43_p0  ;;  %s1833_s27 = smov [#allocation5]  }
   0xc   : > { %s2116_s24 = scalar_select %p1909_p4, 1, 0 }
   0xd   : > { %s2117_s25 = scalar_select %p1914_p6, 1, 0 }
   0xe   : > { %p1919_p8 = pnand %p1291_p5, %p164_p7  ;;  %s176_s28 = sshll.u32 %s1833_s27, 4  ;;  %s177_s28 = int_to_ptr.vmem [resolvable:$true] %s176_s28 }
   0xf   : > { %s1834_s30 = smov [#allocation7]   ;;  %s1835_s7 = smov [#allocation8]  }
  0x10   : > { %s2118_s26 = scalar_select %p1919_p8, 1, 0 }
  0x11   : > { %p1449_p9 = pneg %p1919_p8  ;;  %s190_s6 = sshll.u32 %s1834_s30, 4  ;;  %s191_s6 = int_to_ptr.vmem [resolvable:$true] %s190_s6 }
  0x12   : > { %s200_s8 = sshll.u32 %s1835_s7, 4  ;;  %s1664_s9 = scalar_lea.vmem %s177_s28, 2880  ;;  %s201_s8 = int_to_ptr.vmem [resolvable:$true] %s200_s8 }
  0x13   : > { %p1928_p11 = pnand %p1449_p9, %p2112_p1  ;;  %p1665_p13 = scmp.ne.s32.totalorder %s177_s28, %s1664_s9 }
  0x14   : > { %p1672_p5 = scmp.lt.s32.totalorder %s177_s28, %s177_s28  ;;  %p1673_p7 = scmp.lt.s32.totalorder %s1664_s9, %s1664_s9 }
  0x15   : > { %p1655_p12 = pneg %p1928_p11 }
  0x16   : > { %p1674_p9 = por %p1673_p7, %p1672_p5 }
  0x17   : > { %p1667_p0 = pnand %p1665_p13, %p1655_p12 }
  0x19   : > { %p1668_p3 = pneg %p1667_p0 }
  0x1b   : > { %p1675_p10 = pnand %p1674_p9, %p1668_p3 }
  0x1d   : > { %1678 = shalt.err (!%p1675_p10)
}
  0x1e   : > { %s1836_s10 = smov 320   ;;  %s1837_s11 = smov 20  }
  0x1f   : > { %1452 = dma.hbm_to_vmem [thread:$0]  (!%p1928_p11), %s2107_s1, 2880, %s177_s28, [#allocation6], %s1836_s10, %s1836_s10, %s1837_s11  }
  0x20   : > { %s1690_s14 = scalar_lea.vmem %s191_s6, 80  ;;  %s1697_s15 = scalar_lea.vmem %s191_s6, 96 }
  0x21   : > { %p1691_p1 = scmp.ne.s32.totalorder %s191_s6, %s1690_s14  ;;  %p1698_p2 = scmp.lt.s32.totalorder %s191_s6, %s191_s6 }
  0x22   : > { %p1699_p5 = scmp.lt.s32.totalorder %s1697_s15, %s1690_s14 }
  0x23   : > { %p1693_p13 = pnand %p1691_p1, %p1655_p12 }
  0x24   : > { %p1700_p3 = por %p1699_p5, %p1698_p2 }
  0x25   : > { %p1694_p0 = pneg %p1693_p13 }
  0x27   : > { %p1701_p10 = pnand %p1700_p3, %p1694_p0 }
  0x29   : > { %1704 = shalt.err (!%p1701_p10)
}
  0x2a   : > { %1455 = dma.hbm_to_vmem [thread:$0]  (!%p1928_p11), %s2108_s2, 80, %s191_s6, [#allocation6]  }
  0x2b   : > { %s1716_s23 = scalar_lea.vmem %s201_s8, 8320  ;;  %p1724_p13 = scmp.lt.s32.totalorder %s201_s8, %s201_s8 }
  0x2c   : > { %p1717_p7 = scmp.ne.s32.totalorder %s201_s8, %s1716_s23  ;;  %p1725_p6 = scmp.lt.s32.totalorder %s1716_s23, %s1716_s23 }
  0x2e   : > { %p1719_p1 = pnand %p1717_p7, %p1655_p12  ;;  %p1726_p4 = por %p1725_p6, %p1724_p13 }
  0x30   : > { %p1720_p9 = pneg %p1719_p1 }
  0x32   : > { %p1727_p2 = pnand %p1726_p4, %p1720_p9 }
  0x34   : > { %1730 = shalt.err (!%p1727_p2)
}
  0x35   : > { %s1838_s27 = smov 128   ;;  %s1839_s28 = smov 8  }
  0x36   : > { %1458 = dma.hbm_to_vmem [thread:$0]  (!%p1928_p11), %s2109_s3, 8320, %s201_s8, [#allocation9], %s1838_s27, %s1838_s27, %s1839_s28  }
  0x37   : > { %s1959_s7 = sadd.s32 1, %s1831_s21   ;;  %s30_s10 = sadd.s32 1, %s1827_s20 }
  0x38   : > { %s27_s9 = ssub.s32 %s1831_s21, %s1959_s7  ;;  %p37_p6 = scmp.ne.s32.totalorder %s1827_s20, %s1823_s19 }
  0x39   : > { %p28_p4 = scmp.eq.s32.totalorder %s27_s9, 0  ;;  %p38_p12 = scmp.eq.s32.totalorder %s1831_s21, 0 }
  0x3a   : > { %p1470_p0 = scmp.lt.s32.totalorder %s1831_s21, 2  ;;  %p2120_p3 = scmp.eq.s32.totalorder %s1900_s22, 1 }
  0x3b   : > { %s1969_s11 = scalar_select %p28_p4, %s1827_s20, %s30_s10  }
  0x3c   : > { %p39_p5 = por %p38_p12, %p37_p6  ;;  %p1973_p10 = por %p2120_p3, %p37_p6 }
  0x3d   : > { %s217_s29 = sand.u32 1, %s1827_s20   ;;  %s1410_s13 = sshll.u32 %s1831_s21, 7 }
  0x3e   : > { %s2121_s12 = scalar_select %p1973_p10, 1, 0 }
  0x3f   : > { %s1296_s8 = sshll.u32 %s217_s29, 3  ;;  %s1982_s16 = scalar_lea.hbm %s2106_s0, %s1410_s13 }
  0x40   : > { %s221_s17 = scalar_lea.vmem [#allocation2], %s1296_s8  ;;  %p1984_p11 = pnand %p1470_p0, %p39_p5 }
  0x41   : > { %s228_s23 = sshll.u32 %s221_s17, 4  ;;  %s1990_s28 = scalar_lea.sflag [#allocation3], %s217_s29  ;;  %s1988_s23 = int_to_ptr.vmem [resolvable:$true] %s228_s23 }
  0x42   : > { %s1731_s30 = scalar_lea.hbm %s1982_s16, 128  ;;  %p1733_p1 = pneg %p1984_p11 }
  0x43   : > { %p1732_p7 = scmp.ne.s32.totalorder %s1982_s16, %s1731_s30  ;;  %s1736_s10 = scalar_lea.hbm %s2106_s0, 256 }
  0x44   : > { %p1737_p2 = scmp.lt.s32.totalorder %s1982_s16, %s2106_s0  ;;  %p1738_p4 = scmp.lt.s32.totalorder %s1736_s10, %s1731_s30 }
  0x45   : > { %p1734_p9 = pnand %p1733_p1, %p1732_p7 }
  0x46   : > { %p1739_p6 = por %p1738_p4, %p1737_p2 }
  0x47   : > { %p1735_p13 = pneg %p1734_p9 }
  0x49   : > { %p1740_p12 = pnand %p1739_p6, %p1735_p13 }
  0x4b   : > { %1743 = shalt.err (!%p1740_p12)
}
  0x4c   : > { %s1744_s29 = scalar_lea.vmem %s1988_s23, 128  ;;  %s1840_s14 = smov [#allocation2]  }
  0x4d   : > { %p1745_p0 = scmp.ne.s32.totalorder %s1988_s23, %s1744_s29  ;;  %s1749_s15 = sshll.u32 %s1840_s14, 4  ;;  %s1750_s15 = int_to_ptr.vmem [resolvable:$false] %s1749_s15 }
  0x4e   : > { %s1751_s17 = scalar_lea.vmem %s1750_s15, 256  ;;  %p1752_p7 = scmp.lt.s32.totalorder %s1988_s23, %s1750_s15 }
  0x4f   : > { %p1747_p5 = pnand %p1745_p0, %p1733_p1  ;;  %p1753_p9 = scmp.lt.s32.totalorder %s1751_s17, %s1744_s29 }
  0x51   : > { %p1748_p3 = pneg %p1747_p5  ;;  %p1754_p10 = por %p1753_p9, %p1752_p7 }
  0x53   : > { %p1755_p8 = pnand %p1754_p10, %p1748_p3 }
  0x55   : > { %1758 = shalt.err (!%p1755_p8)
}
  0x56   : > { %s1841_s30 = smov 64   ;;  %s1842_s6 = smov 4  }
  0x57   : > { %1462 = dma.hbm_to_vmem [thread:$0]  (!%p1984_p11), %s1982_s16, 128, %s1988_s23, %s1990_s28, %s1841_s30, %s1841_s30, %s1842_s6  }
  0x58   : > { %p2123_p1 = scmp.ne.s32.totalorder %s2118_s26, 0 }
  0x59   : > { %s2014_s9 = sand.u32 (!%p2123_p1), 1, %s1823_s19   ;;  %p2124_p8 = scmp.ne.s32.totalorder (!%p2123_p1), %s2116_s24, 0 }
  0x5a   : > { %240 = sbr.rel (%p2123_p1) target bundleno = 563 (0x233), region = 40  ;;  %s1300_s10 = sshll.u32 (!%p2123_p1), %s2014_s9, 3 }
  0x5b   : > { %s243_s13 = scalar_lea.sflag (!%p2123_p1), [#allocation3], %s2014_s9  ;;  %s2018_s8 = scalar_lea.vmem (!%p2123_p1), [#allocation2], %s1300_s10 }
  0x5f   : > { %1802 = dma.done.wait (%p2124_p8), %s243_s13, 128  }
  0x60   : > { %1804 = vsyncadd (%p2124_p8), %s243_s13, 4294967168  ;;  %p2125_p10 = scmp.eq.s32.totalorder %s1900_s22, 0 }
  0x62   : > { %1806 = dma.done.wait (%p2125_p10), [#allocation6], 2960   ;;  %p2126_p11 = pmov %p2125_p10 }
  0x63   : > { %p2127_p13 = pmov %p2125_p10 }
  0x64   : > { %1808 = vsyncadd (%p2126_p11), [#allocation6], 4294964336 }
  0x65   : > { %1810 = dma.done.wait (%p2127_p13), [#allocation9], 8320   ;;  %p2128_p2 = pmov %p2125_p10 }
  0x66   : > { %v1843_v0 = vmov 0   ;;  %v314_v1 = vld [vmem:[#allocation5 + $0xa0] sm:$0x33]  ;;  %vm470_vm0 = vcmask 1041408   ;;  %v315_v2 = vld [vmem:[#allocation5 + $0xa8] sm:$0x33] }
  0x67   : > { %1812 = vsyncadd (%p2128_p2), [#allocation9], 4294958976  ;;  %518 = vmatprep.mubr.bf16.mxu0 %v1843_v0  ;;  %561 = vmatprep.mubr.bf16.mxu1 %v1843_v0  ;;  %v1327_v3 = vcombine.high %v314_v1, %v314_v1  ;;  %v1326_v4 = vcombine.low %v314_v1, %v314_v1  ;;  %v1329_v5 = vcombine.high %v315_v2, %v315_v2  ;;  %v1525_v7 = vld [vmem:[#allocation5 + $0x7c] ss:$20 sps:$4 sm:$0xff]   ;;  %v1528_v8 = vld [vmem:[#allocation5 + $0x84] ss:$20 sps:$4 sm:$0xff]  }
  0x68   : > { %v1328_v6 = vcombine.low %v315_v2, %v315_v2  ;;  %v1527_v11 = vld [vmem:[#allocation5 + $0x78] ss:$20 sps:$4 sm:$0xff]   ;;  %v1530_v12 = vld [vmem:[#allocation5 + $0x80] ss:$20 sps:$4 sm:$0xff]   ;;  %v1534_v14 = vld [vmem:[#allocation5 + $0x5c] ss:$20 sps:$4 sm:$0xff]  }
  0x69   : > { %1331 = vmatprep.subr.msk.bf16.mxu0 %vm470_vm0, %v1327_v3  ;;  %v472_v9 = vsel %vm470_vm0, %v1326_v4, 0  ;;  %1333 = vmatprep.subr.msk.bf16.mxu1 %vm470_vm0, %v1329_v5  ;;  %v1531_v13 = vld [vmem:[#allocation5 + $0x54] ss:$20 sps:$4 sm:$0xff]   ;;  %v1533_v15 = vld [vmem:[#allocation5 + $0x50] ss:$20 sps:$4 sm:$0xff]   ;;  %vm466_vm1 = vcmask 556032  }
  0x6a   : > { %v478_v10 = vsel %vm470_vm0, %v1328_v6, 0  ;;  %493 = vmatpush1.bf16.msra.mxu0 %v472_v9  ;;  %v1536_v16 = vld [vmem:[#allocation5 + $0x58] ss:$20 sps:$4 sm:$0xff]   ;;  %v1540_v18 = vld [vmem:[#allocation5 + $0x34] ss:$20 sps:$4 sm:$0xff]   ;;  %v1844_v28 = vmov 0.0  }
  0x6b   : > { %536 = vmatpush1.bf16.msra.mxu1 %v478_v10  ;;  %494 = vmatprep.subr.bf16.mxu0 %v1525_v7  ;;  %v1537_v17 = vld [vmem:[#allocation5 + $0x2c] ss:$20 sps:$4 sm:$0xff]   ;;  %v1539_v19 = vld [vmem:[#allocation5 + $0x28] ss:$20 sps:$4 sm:$0xff]   ;;  %v1542_v20 = vld [vmem:[#allocation5 + $0x30] ss:$20 sps:$4 sm:$0xff]  }
  0x6c   : > { %537 = vmatprep.subr.bf16.mxu1 %v1528_v8  ;;  %v1543_v21 = vld [vmem:[#allocation5 + $0x4] ss:$20 sps:$4 sm:$0xff]   ;;  %v1546_v22 = vld [vmem:[#allocation5 + $0xc] ss:$20 sps:$4 sm:$0xff]   ;;  %v1548_v24 = vld [vmem:[#allocation5 + $0x8] ss:$20 sps:$4 sm:$0xff]  }
  0x6d   : > { %v1545_v23 = vld [vmem:[#allocation5] ss:$20 sps:$4 sm:$0xff]   ;;  %v1550_v25 = vld [vmem:[#allocation5 + $0xb0] ss:$0 sps:$4 sm:$0x33]   ;;  %vm1845_vm2 = vmmov 0  }
  0x6e   : > { %495 = vmatpush1.bf16.msra.mxu0 %v1527_v11  ;;  %v1557_v26 = vld [vmem:[#allocation8 + $0x74] ss:$8 sps:$4 sm:$0xff]   ;;  %v484_v29 = vsel %vm470_vm0, %v1550_v25, 0  ;;  %v1555_v30 = vld [vmem:[#allocation8 + $0x70] ss:$8 sps:$4 sm:$0xff]   ;;  %vm1030_vm3 = vcmask 31744  }
  0x6f   : > { %538 = vmatpush1.bf16.msra.mxu1 %v1530_v12  ;;  %496 = vmatprep.subr.bf16.mxu0 %v1531_v13  ;;  %v1549_v27 = vld [vmem:[%s2018_s8] sm:$0xff]   ;;  %s1304_s16 = sshll.u32 %s2014_s9, 5  ;;  %s1412_s28 = sshll.u32 %s1900_s22, 9 }
  0x70   : > { %539 = vmatprep.subr.bf16.mxu1 %v1534_v14  ;;  %v1563_v31 = vld [vmem:[#allocation8 + $0x64] ss:$8 sps:$4 sm:$0xff]   ;;  %v1561_v33 = vld [vmem:[#allocation8 + $0x60] ss:$8 sps:$4 sm:$0xff]   ;;  %v1569_v34 = vld [vmem:[#allocation8 + $0x54] ss:$8 sps:$4 sm:$0xff]   ;;  %s2063_s15 = scalar_lea.hbm %s2111_s5, %s1412_s28 }
  0x71   : > { %v1551_v32 = vld [vmem:[#allocation5 + $0x88] ss:$20 sps:$4 sm:$0xff]   ;;  %v1552_v35 = vld [vmem:[#allocation5 + $0x60] ss:$20 sps:$4 sm:$0xff]   ;;  %v1553_v38 = vld [vmem:[#allocation5 + $0x38] ss:$20 sps:$4 sm:$0xff]  }
  0x72   : > { %497 = vmatpush1.bf16.msra.mxu0 %v1533_v15  ;;  %v1567_v36 = vld [vmem:[#allocation8 + $0x50] ss:$8 sps:$4 sm:$0xff]   ;;  %v1575_v37 = vld [vmem:[#allocation8 + $0x44] ss:$8 sps:$4 sm:$0xff]   ;;  %v1573_v39 = vld [vmem:[#allocation8 + $0x40] ss:$8 sps:$4 sm:$0xff]  }
  0x73   : > { %540 = vmatpush1.bf16.msra.mxu1 %v1536_v16  ;;  %498 = vmatprep.subr.bf16.mxu0 %v1537_v17  ;;  %v1581_v40 = vld [vmem:[#allocation8 + $0x34] ss:$8 sps:$4 sm:$0xff]   ;;  %v1579_v43 = vld [vmem:[#allocation8 + $0x30] ss:$8 sps:$4 sm:$0xff]   ;;  %v1587_v44 = vld [vmem:[#allocation8 + $0x24] ss:$8 sps:$4 sm:$0xff]  }
  0x74   : > { %541 = vmatprep.subr.bf16.mxu1 %v1540_v18  ;;  %v1554_v41 = vld [vmem:[#allocation5 + $0x10] ss:$20 sps:$4 sm:$0xff]   ;;  %s284_s23 = scalar_lea.vmem [#allocation10], %s1304_s16  ;;  %s1174_s17 = scalar_lea.sflag [#allocation4], %s2014_s9 }
  0x75   : > { %v1560_v42 = vld [vmem:[#allocation8 + $0x174] ss:$8 sps:$4 sm:$0xff]   ;;  %v1558_v45 = vld [vmem:[#allocation8 + $0x170] ss:$8 sps:$4 sm:$0xff]   ;;  %v1566_v46 = vld [vmem:[#allocation8 + $0x164] ss:$8 sps:$4 sm:$0xff]  }
  0x76   : > { %499 = vmatpush1.bf16.msra.mxu0 %v1539_v19  ;;  %v1585_v47 = vld [vmem:[#allocation8 + $0x20] ss:$8 sps:$4 sm:$0xff]   ;;  %v1593_v48 = vld [vmem:[#allocation8 + $0x14] ss:$8 sps:$4 sm:$0xff]   ;;  %v1591_v51 = vld [vmem:[#allocation8 + $0x10] ss:$8 sps:$4 sm:$0xff]  }
  0x77   : > { %542 = vmatpush1.bf16.msra.mxu1 %v1542_v20  ;;  %500 = vmatprep.subr.bf16.mxu0 %v1543_v21  ;;  %v1564_v49 = vld [vmem:[#allocation8 + $0x160] ss:$8 sps:$4 sm:$0xff]   ;;  %v1572_v50 = vld [vmem:[#allocation8 + $0x154] ss:$8 sps:$4 sm:$0xff]   ;;  %v1599_v52 = vld [vmem:[#allocation8 + $0x4] ss:$8 sps:$4 sm:$0xff]  }
  0x78   : > { %543 = vmatprep.subr.bf16.mxu1 %v1546_v22  ;;  %v1570_v53 = vld [vmem:[#allocation8 + $0x150] ss:$8 sps:$4 sm:$0xff]   ;;  %v1578_v54 = vld [vmem:[#allocation8 + $0x144] ss:$8 sps:$4 sm:$0xff]   ;;  %v1597_v55 = vld [vmem:[#allocation8] ss:$8 sps:$4 sm:$0xff]  }
  0x79   : > { %v1576_v56 = vld [vmem:[#allocation8 + $0x140] ss:$8 sps:$4 sm:$0xff]   ;;  %v1605_v57 = vld [vmem:[#allocation8 + $0xf4] ss:$8 sps:$4 sm:$0xff]   ;;  %v1603_v59 = vld [vmem:[#allocation8 + $0xf0] ss:$8 sps:$4 sm:$0xff]  }
  0x7a   : > { %501 = vmatpush1.bf16.msra.mxu0 %v1545_v23  ;;  %v1584_v58 = vld [vmem:[#allocation8 + $0x134] ss:$8 sps:$4 sm:$0xff]   ;;  %v1611_v60 = vld [vmem:[#allocation8 + $0xe4] ss:$8 sps:$4 sm:$0xff]   ;;  %v1582_v61 = vld [vmem:[#allocation8 + $0x130] ss:$8 sps:$4 sm:$0xff]  }
  0x7b   : > { %544 = vmatpush1.bf16.msra.mxu1 %v1548_v24  ;;  %1419 = vmatprep.subr.bf16.mxu0 %v1844_v28  ;;  %v1590_v62 = vld [vmem:[#allocation8 + $0x124] ss:$8 sps:$4 sm:$0xff]   ;;  %v1609_v63 = vld [vmem:[#allocation8 + $0xe0] ss:$8 sps:$4 sm:$0xff]   ;;  %v1617_v1 = vld [vmem:[#allocation8 + $0xd4] ss:$8 sps:$4 sm:$0xff]  }
  0x7c   : > { %1040 = vmatprep.subr.bf16.mxu1 %v1557_v26  ;;  %v1588_v2 = vld [vmem:[#allocation8 + $0x120] ss:$8 sps:$4 sm:$0xff]   ;;  %v1596_v3 = vld [vmem:[#allocation8 + $0x114] ss:$8 sps:$4 sm:$0xff]   ;;  %v1615_v4 = vld [vmem:[#allocation8 + $0xd0] ss:$8 sps:$4 sm:$0xff]  }
  0x7d   : > { %1332 = vmatmul.mubr.msk.bf16.vlgmr.msra.gmra.mxu0 %vm466_vm1, %v1549_v27  ;;  %v1623_v5 = vld [vmem:[#allocation8 + $0xc4] ss:$8 sps:$4 sm:$0xff]   ;;  %v1594_v6 = vld [vmem:[#allocation8 + $0x110] ss:$8 sps:$4 sm:$0xff]   ;;  %v1621_v8 = vld [vmem:[#allocation8 + $0xc0] ss:$8 sps:$4 sm:$0xff]  }
  0x7e   : > { %1334 = vmatmul.mubr.msk.bf16.vlgmr.msra.gmra.mxu1 %vm466_vm1, %v1549_v27  ;;  %1420 = vmatpush3.bf16.msra.mxu0 %v484_v29  ;;  %v1602_v7 = vld [vmem:[#allocation8 + $0x104] ss:$8 sps:$4 sm:$0xff]   ;;  %v1629_v9 = vld [vmem:[#allocation8 + $0xb4] ss:$8 sps:$4 sm:$0xff]   ;;  %v1600_v10 = vld [vmem:[#allocation8 + $0x100] ss:$8 sps:$4 sm:$0xff]  }
  0x7f   : > { %1429 = vmatprep.mubr.msk.bf16.mxu0 %vm1845_vm2, %v1844_v28  ;;  %1421 = vmatprep.subr.bf16.mxu0 %v1844_v28  ;;  %v1608_v11 = vld [vmem:[#allocation8 + $0x1f4] ss:$8 sps:$4 sm:$0xff]   ;;  %v1627_v12 = vld [vmem:[#allocation8 + $0xb0] ss:$8 sps:$4 sm:$0xff]   ;;  %v1614_v14 = vld [vmem:[#allocation8 + $0x1e4] ss:$8 sps:$4 sm:$0xff]  }
  0x80   : > { %1041 = vmatpush1.bf16.msra.mxu1 %v1555_v30  ;;  %v1606_v13 = vld [vmem:[#allocation8 + $0x1f0] ss:$8 sps:$4 sm:$0xff]   ;;  %v1612_v15 = vld [vmem:[#allocation8 + $0x1e0] ss:$8 sps:$4 sm:$0xff]   ;;  %v1620_v16 = vld [vmem:[#allocation8 + $0x1d4] ss:$8 sps:$4 sm:$0xff]  }
  0x81   : > { %1042 = vmatprep.subr.bf16.mxu1 %v1563_v31  ;;  %v1618_v17 = vld [vmem:[#allocation8 + $0x1d0] ss:$8 sps:$4 sm:$0xff]   ;;  %v1626_v18 = vld [vmem:[#allocation8 + $0x1c4] ss:$8 sps:$4 sm:$0xff]   ;;  %v1624_v19 = vld [vmem:[#allocation8 + $0x1c0] ss:$8 sps:$4 sm:$0xff]  }
  0x82   : > { %1422 = vmatpush3.bf16.msra.mxu0 %v1551_v32  ;;  %v1632_v20 = vld [vmem:[#allocation8 + $0x1b4] ss:$8 sps:$4 sm:$0xff]   ;;  %v1635_v21 = vld [vmem:[#allocation8 + $0xa4] ss:$8 sps:$4 sm:$0xff]   ;;  %v1630_v22 = vld [vmem:[#allocation8 + $0x1b0] ss:$8 sps:$4 sm:$0xff]  }
  0x83   : > { %1423 = vmatprep.subr.bf16.mxu0 %v1844_v28  ;;  %v1633_v23 = vld [vmem:[#allocation8 + $0xa0] ss:$8 sps:$4 sm:$0xff]   ;;  %v1638_v24 = vld [vmem:[#allocation8 + $0x1a4] ss:$8 sps:$4 sm:$0xff]   ;;  %v1641_v25 = vld [vmem:[#allocation8 + $0x94] ss:$8 sps:$4 sm:$0xff]  }
  0x84   : > { %1043 = vmatpush1.bf16.msra.mxu1 %v1561_v33  ;;  %v1636_v26 = vld [vmem:[#allocation8 + $0x1a0] ss:$8 sps:$4 sm:$0xff]   ;;  %v1647_v29 = vld [vmem:[#allocation8 + $0x84] ss:$8 sps:$4 sm:$0xff]   ;;  %v1642_v30 = vld [vmem:[#allocation8 + $0x190] ss:$8 sps:$4 sm:$0xff]  }
  0x85   : > { %1044 = vmatprep.subr.bf16.mxu1 %v1569_v34  ;;  %v1645_v31 = vld [vmem:[#allocation8 + $0x80] ss:$8 sps:$4 sm:$0xff]   ;;  %v1650_v32 = vld [vmem:[#allocation8 + $0x184] ss:$8 sps:$4 sm:$0xff]   ;;  %s1188_s27 = sshll.u32 %s284_s23, 4  ;;  %p2129_p6 = scmp.ne.s32.totalorder %s2121_s12, 0  ;;  %s2058_s27 = int_to_ptr.vmem [resolvable:$true] %s1188_s27 }
  0x86   : > { %1424 = vmatpush3.bf16.msra.mxu0 %v1552_v35  ;;  %v1648_v33 = vld [vmem:[#allocation8 + $0x180] ss:$8 sps:$4 sm:$0xff]   ;;  %s1759_s22 = scalar_lea.vmem %s2058_s27, 512  ;;  %s1846_s30 = smov [#allocation10]  }
  0x87   : > { %1425 = vmatprep.subr.bf16.mxu0 %v1844_v28  ;;  %v692_v34 = vld [vmem:[#allocation8 + $0x200] sm:$0x33]  ;;  %p1760_p4 = scmp.ne.s32.totalorder %s2058_s27, %s1759_s22  ;;  %s1763_s6 = sshll.u32 %s1846_s30, 4  ;;  %s1764_s6 = int_to_ptr.vmem [resolvable:$false] %s1763_s6 }
  0x88   : > { %1045 = vmatpush1.bf16.msra.mxu1 %v1567_v36  ;;  %v1401_v35 = vcombine.high %v692_v34, %v692_v34  ;;  %v319_v36 = vlaneseq  ;;  %s1765_s10 = scalar_lea.vmem %s1764_s6, 1024  ;;  %p1766_p5 = scmp.lt.s32.totalorder %s2058_s27, %s1764_s6 }
  0x89   : > { %1046 = vmatprep.subr.bf16.mxu1 %v1575_v37  ;;  %p1761_p12 = pnand %p1760_p4, %p2129_p6  ;;  %p1767_p3 = scmp.lt.s32.totalorder %s1765_s10, %s1759_s22 }
  0x8a   : > { %1426 = vmatpush3.bf16.msra.mxu0 %v1553_v38  ;;  %v2044_v37 = vshrl.u32 %v319_v36, 7 }
  0x8b   : > { %1427 = vmatprep.subr.bf16.mxu0 %v1844_v28  ;;  %v1644_v28 = vld [vmem:[#allocation8 + $0x194] ss:$8 sps:$4 sm:$0xff]   ;;  %p1762_p0 = pneg %p1761_p12  ;;  %p1768_p7 = por %p1767_p3, %p1766_p5 }
  0x8c   : > { %1047 = vmatpush1.bf16.msra.mxu1 %v1573_v39  ;;  %v329_v38 = vsub.s32 2, %v2044_v37  ;;  %v333_v39 = vsub.s32 3, %v2044_v37 }
  0x8d   : > { %1048 = vmatprep.subr.bf16.mxu1 %v1581_v40  ;;  %v317_v40 = vld [vmem:[#allocation7] sm:$0x1f]  ;;  %p1769_p9 = pnand %p1768_p7, %p1762_p0 }
  0x8e   : > { %1428 = vmatpush3.bf16.msra.mxu0 %v1554_v41  ;;  %v325_v41 = vsub.s32 1, %v2044_v37 }
  0x8f   : > { %1083 = vmatprep.subr.bf16.mxu0 %v1560_v42  ;;  %v321_v42 = vsub.s32 0, %v2044_v37 }
  0x90   : > { %1049 = vmatpush1.bf16.msra.mxu1 %v1579_v43  ;;  %v330_v43 = vrot.slane %v317_v40, %v329_v38 }
  0x91   : > { %1050 = vmatprep.subr.bf16.mxu1 %v1587_v44  ;;  %1430 = vmatmul.mubr.msk.bf16.vlgmr.msra.gmra.mxu0 %vm466_vm1, %v1549_v27  ;;  %v1639_v27 = vld [vmem:[#allocation8 + $0x90] ss:$8 sps:$4 sm:$0xff]   ;;  %v334_v44 = vrot.slane %v317_v40, %v333_v39 }
  0x92   : > { %1084 = vmatpush1.bf16.msra.mxu0 %v1558_v45 }
  0x93   : > { %1085 = vmatprep.subr.bf16.mxu0 %v1566_v46 }
  0x94   : > { %1051 = vmatpush1.bf16.msra.mxu1 %v1585_v47  ;;  %v326_v47 = vrot.slane %v317_v40, %v325_v41 }
  0x95   : > { %1052 = vmatprep.subr.bf16.mxu1 %v1593_v48  ;;  %v322_v48 = vrot.slane %v317_v40, %v321_v42 }
  0x96   : > { %1086 = vmatpush1.bf16.msra.mxu0 %v1564_v49 }
  0x97   : > { %1087 = vmatprep.subr.bf16.mxu0 %v1572_v50 }
  0x98   : > { %1053 = vmatpush1.bf16.msra.mxu1 %v1591_v51 }
  0x99   : > { %1054 = vmatprep.subr.bf16.mxu1 %v1599_v52 }
  0x9a   : > { %1088 = vmatpush1.bf16.msra.mxu0 %v1570_v53 }
  0x9b   : > { %1089 = vmatprep.subr.bf16.mxu0 %v1578_v54 }
  0x9c   : > { %1055 = vmatpush1.bf16.msra.mxu1 %v1597_v55 }
  0x9d   : > { %1056 = vmatprep.subr.bf16.mxu1 %v1605_v57 }
  0x9e   : > { %1090 = vmatpush1.bf16.msra.mxu0 %v1576_v56 }
  0x9f   : > { %1091 = vmatprep.subr.bf16.mxu0 %v1584_v58 }
  0xa0   : > { %1057 = vmatpush2.bf16.msra.mxu1 %v1603_v59 }
  0xa1   : > { %1058 = vmatprep.subr.bf16.mxu1 %v1611_v60 }
  0xa2   : > { %1092 = vmatpush1.bf16.msra.mxu0 %v1582_v61 }
  0xa3   : > { %1093 = vmatprep.subr.bf16.mxu0 %v1590_v62 }
  0xa4   : > { %1059 = vmatpush2.bf16.msra.mxu1 %v1609_v63 }
  0xa5   : > { %1060 = vmatprep.subr.bf16.mxu1 %v1617_v1 }
  0xa6   : > { %1094 = vmatpush1.bf16.msra.mxu0 %v1588_v2 }
  0xa7   : > { %1095 = vmatprep.subr.bf16.mxu0 %v1596_v3 }
  0xa8   : > { %1061 = vmatpush2.bf16.msra.mxu1 %v1615_v4  ;;  %v1400_v4 = vcombine.low %v692_v34, %v692_v34 }
  0xa9   : > { %1062 = vmatprep.subr.bf16.mxu1 %v1623_v5 }
  0xaa   : > { %1096 = vmatpush1.bf16.msra.mxu0 %v1594_v6 }
  0xab   : > { %1097 = vmatprep.subr.bf16.mxu0 %v1602_v7 }
  0xac   : > { %1063 = vmatpush2.bf16.msra.mxu1 %v1621_v8 }
  0xad   : > { %1064 = vmatprep.subr.bf16.mxu1 %v1629_v9 }
  0xae   : > { %1098 = vmatpush1.bf16.msra.mxu0 %v1600_v10 }
  0xaf   : > { %1099 = vmatprep.subr.bf16.mxu0 %v1608_v11 }
  0xb0   : > { %1065 = vmatpush2.bf16.msra.mxu1 %v1627_v12 }
  0xb1   : > { %1066 = vmatprep.subr.bf16.mxu1 %v1635_v21 }
  0xb2   : > { %1100 = vmatpush2.bf16.msra.mxu0 %v1606_v13  ;;  %v1035_v13 = vsel %vm470_vm0, %v1400_v4, 0 }
  0xb3   : > { %1101 = vmatprep.subr.bf16.mxu0 %v1614_v14  ;;  %v337_v14 = vsub.s32 4, %v2044_v37 }
  0xb4   : > { %1067 = vmatpush2.bf16.msra.mxu1 %v1633_v23 }
  0xb5   : > { %1068 = vmatprep.subr.bf16.mxu1 %v1641_v25 }
  0xb6   : > { %1102 = vmatpush2.bf16.msra.mxu0 %v1612_v15  ;;  %v338_v15 = vrot.slane %v317_v40, %v337_v14 }
  0xb7   : > { %1103 = vmatprep.subr.bf16.mxu0 %v1620_v16 }
  0xb8   : > { %1069 = vmatpush2.bf16.msra.mxu1 %v1639_v27 }
  0xb9   : > { %1070 = vmatprep.subr.bf16.mxu1 %v1647_v29 }
  0xba   : > { %1104 = vmatpush2.bf16.msra.mxu0 %v1618_v17 }
  0xbb   : > { %1105 = vmatprep.subr.bf16.mxu0 %v1626_v18 }
  0xbc   : > { %1071 = vmatpush2.bf16.msra.mxu1 %v1645_v31 }
  0xbd   : > { %1402 = vmatprep.subr.msk.bf16.mxu1 %vm470_vm0, %v1401_v35 }
  0xbe   : > { %1106 = vmatpush2.bf16.msra.mxu0 %v1624_v19 }
  0xbf   : > { %1107 = vmatprep.subr.bf16.mxu0 %v1632_v20 }
  0xc2   : > { %1108 = vmatpush2.bf16.msra.mxu0 %v1630_v22 }
  0xc3   : > { %1109 = vmatprep.subr.bf16.mxu0 %v1638_v24 }
  0xc6   : > { %1110 = vmatpush2.bf16.msra.mxu0 %v1636_v26  ;;  %v693_v26 = vld [vmem:[%s2110_s4] sm:$0x3] }
  0xc7   : > { %1111 = vmatprep.subr.bf16.mxu0 %v1644_v28  ;;  %v698_v28 = vrot.slane %v693_v26, %v321_v42  ;;  %v702_v29 = vrot.slane %v693_v26, %v325_v41 }
  0xca   : > { %1112 = vmatpush2.bf16.msra.mxu0 %v1642_v30 }
  0xcb   : > { %1113 = vmatprep.subr.bf16.mxu0 %v1650_v32 }
  0xce   : > { %1114 = vmatpush2.bf16.msra.mxu0 %v1648_v33 }
 0x13d   : > { %v520_v45 = vpop.f32.mrf.mxu0 }
 0x13e   : > { %v563_v46 = vpop.f32.mrf.mxu1  ;;  %v521_v58 = vadd.f32 %v520_v45, %v322_v48 }
 0x13f   : > { %v522_v49 = vpop.f32.mrf.mxu0  ;;  %v564_v50 = vadd.f32 %v563_v46, %v330_v43 }
 0x140   : > { %v565_v51 = vpop.f32.mrf.mxu1  ;;  %v523_v55 = vadd.f32 %v522_v49, %v326_v47  ;;  %v613_v8 = vmax.f32 %v521_v58, 0.0 }
 0x141   : > { %v566_v52 = vadd.f32 %v565_v51, %v334_v44  ;;  %v524_v53 = vpop.f32.mrf.mxu0  ;;  %v615_v59 = vmax.f32 %v564_v50, 0.0 }
 0x142   : > { %v567_v54 = vpop.f32.mrf.mxu1  ;;  %v525_v56 = vadd.f32 %v524_v53, %v322_v48  ;;  %v614_v5 = vmax.f32 %v523_v55, 0.0 }
 0x143   : > { %v568_v57 = vadd.f32 %v567_v54, %v330_v43  ;;  %v526_v60 = vpop.f32.mrf.mxu0  ;;  %v616_v62 = vmax.f32 %v566_v52, 0.0 }
 0x144   : > { %v569_v61 = vpop.f32.mrf.mxu1  ;;  %v527_v63 = vadd.f32 %v526_v60, %v326_v47  ;;  %v618_v3 = vmax.f32 %v525_v56, 0.0 }
 0x145   : > { %v620_v1 = vmax.f32 %v568_v57, 0.0  ;;  %v570_v2 = vadd.f32 %v569_v61, %v334_v44 }
 0x146   : > { %v619_v6 = vmax.f32 %v527_v63, 0.0  ;;  %v623_v12 = vpack.c.bf16 %v618_v3, %v613_v8 }
 0x147   : > { %v621_v7 = vmax.f32 %v570_v2, 0.0  ;;  %v625_v9 = vpack.c.bf16 %v620_v1, %v615_v59 }
 0x148   : > { %v624_v10 = vpack.c.bf16 %v619_v6, %v614_v5 }
 0x149   : > { %v626_v11 = vpack.c.bf16 %v621_v7, %v616_v62 }
 0x14a   : > { %1072 = vmatprep.mubr.bf16.mxu1 %v624_v10 }
 0x14b   : > { %1115 = vmatprep.mubr.bf16.mxu0 %v626_v11  ;;  %1073 = vmatmul.mubr.bf16.vlgmr.msra.gmra.mxu1 %v623_v12 }
 0x14c   : > { %1116 = vmatmul.mubr.bf16.vlgmr.msra.gmra.mxu0 %v625_v9  ;;  %1141 = vmatpush1.bf16.msra.mxu1 %v1035_v13 }
 0x14d   : > { %1158 = vmatprep.mubr.bf16.mxu1 %v1843_v0 }
 0x151   : > { %v606_v16 = vpop.f32.mrf.mxu0 }
 0x152   : > { %v607_v18 = vadd.f32 %v606_v16, %v338_v15 }
 0x153   : > { %v1431_v17 = vpop.f32.mrf.mxu0 }
 0x154   : > { %v617_v22 = vmax.f32 %v607_v18, 0.0 }
 0x155   : > { %v609_v19 = vpop.f32.mrf.mxu0 }
 0x156   : > { %v610_v20 = vadd.f32 %v609_v19, %v338_v15 }
 0x157   : > { %v1432_v21 = vpop.f32.mrf.mxu0 }
 0x158   : > { %v622_v23 = vmax.f32 %v610_v20, 0.0 }
 0x15a   : > { %v627_v24 = vpack.c.bf16 %v622_v23, %v617_v22 }
 0x15c   : > { %1403 = vmatmul.mubr.msk.bf16.vlgmr.msra.gmra.mxu1 %vm1030_vm3, %v627_v24 }
 0x20b   : > { %v1074_v25 = vpop.f32.mrf.mxu1 }
 0x20c   : > { %v1117_v0 = vpop.f32.mrf.mxu0  ;;  %v1075_v32 = vadd.f32 %v1074_v25, %v698_v28 }
 0x20d   : > { %v1076_v27 = vpop.f32.mrf.mxu1 }
 0x20e   : > { %v1119_v31 = vpop.f32.mrf.mxu0  ;;  %v1077_v33 = vadd.f32 %v1076_v27, %v702_v29  ;;  %v1118_v36 = vadd.f32 %v1117_v0, %v1075_v32 }
 0x20f   : > { %v1078_v30 = vpop.f32.mrf.mxu1 }
 0x210   : > { %v1121_v35 = vpop.f32.mrf.mxu0  ;;  %v1079_v37 = vadd.f32 %v1078_v30, %v698_v28  ;;  %v1120_v39 = vadd.f32 %v1119_v31, %v1077_v33 }
 0x211   : > { %v1080_v34 = vpop.f32.mrf.mxu1 }
 0x212   : > { %v1081_v40 = vadd.f32 %v1080_v34, %v702_v29  ;;  %v1123_v44 = vpop.f32.mrf.mxu0  ;;  %v1122_v41 = vadd.f32 %v1121_v35, %v1079_v37 }
 0x214   : > { %v1124_v47 = vadd.f32 %v1123_v44, %v1081_v40 }
 0x21c   : > { %v1160_v38 = vpop.f32.mrf.mxu1 }
 0x21d   : > { %v1161_v43 = vadd.f32 %v1160_v38, %v1118_v36 }
 0x21e   : > { %v1162_v42 = vpop.f32.mrf.mxu1 }
 0x21f   : > { %1169 = vst [vmem:[%s284_s23] sm:$0xff] %v1161_v43  ;;  %v1163_v45 = vadd.f32 %v1162_v42, %v1120_v39 }
 0x220   : > { %v1164_v46 = vpop.f32.mrf.mxu1 }
 0x221   : > { %1170 = vst [vmem:[%s284_s23 + $0x8] sm:$0xff] %v1163_v45  ;;  %v1165_v48 = vadd.f32 %v1164_v46, %v1122_v41 }
 0x222   : > { %v1166_v49 = vpop.f32.mrf.mxu1 }
 0x223   : > { %1171 = vst [vmem:[%s284_s23 + $0x10] sm:$0xff] %v1165_v48  ;;  %v1167_v50 = vadd.f32 %v1166_v49, %v1124_v47 }
 0x225   : > { %1172 = vst [vmem:[%s284_s23 + $0x18] sm:$0xff] %v1167_v50 }
 0x226   : > { %1772 = shalt.err (!%p1769_p9)
}
 0x227   : > { %s1773_s13 = scalar_lea.hbm %s2063_s15, 512  ;;  %s1777_s26 = scalar_lea.hbm %s2111_s5, 1024 }
 0x228   : > { %p1774_p1 = scmp.ne.s32.totalorder %s2063_s15, %s1773_s13  ;;  %p1778_p11 = scmp.lt.s32.totalorder %s2063_s15, %s2111_s5 }
 0x229   : > { %p1779_p13 = scmp.lt.s32.totalorder %s1777_s26, %s1773_s13 }
 0x22a   : > { %p1775_p8 = pnand %p1774_p1, %p2129_p6 }
 0x22b   : > { %p1780_p2 = por %p1779_p13, %p1778_p11 }
 0x22c   : > { %p1776_p10 = pneg %p1775_p8 }
 0x22e   : > { %p1781_p4 = pnand %p1780_p2, %p1776_p10 }
 0x230   : > { %1784 = shalt.err (!%p1781_p4)
}
 0x231   : > { %s1847_s28 = smov 256   ;;  %s1848_s29 = smov 16  }
 0x232   : > { %1447 = dma.vmem_to_hbm [thread:$0]  (%p2129_p6), %s2058_s27, 512, %s2063_s15, %s1174_s17, %s1847_s28, %s1847_s28, %s1848_s29  }
 0x233 PF: > { %s1203_s14 = sand.u32 1, %s1819_s18   ;;  %p2130_p12 = scmp.ne.s32.totalorder %s2117_s25, 0 }
 0x234   : > { %p2131_p0 = scmp.ge.s32.totalorder %s1831_s21, 2  ;;  %s1204_s22 = scalar_lea.sflag [#allocation4], %s1203_s14 }
 0x236   : > { %p1464_p5 = pnand %p2131_p0, %p2130_p12 }
 0x238   : > { %p1465_p3 = pneg %p1464_p5 }
 0x23a   : > { %1814 = dma.done.wait (%p1465_p3), %s1204_s22, 512  }
 0x23b   : > { %1816 = vsyncadd (%p1465_p3), %s1204_s22, 4294966784  ;;  %p20_p7 = scmp.ge.s32.totalorder %s1959_s7, 4   ;;  %s2132_s18 = smov %s1823_s19 }
 0x23c   : > { %s2133_s19 = smov %s1827_s20  ;;  %s2134_s20 = smov %s1969_s11 }
 0x23d   : > { %s2135_s21 = smov %s1959_s7  ;;  %22 = sbr.rel (!%p20_p7) target bundleno = 7 (0x7), region = 97 }
 0x242   :  { %1209 = vsyncpa [#allocation3], 1 }
 0x243   :  { %1211 = vsyncpa [#allocation3 + $0x1], 1 }
 0x244   :  { %1212 = vsyncpa [#allocation6], 1 }
 0x245   :  { %1213 = vsyncpa [#allocation9], 1 }
 0x246   :  { %1214 = vsyncpa [#allocation4], 1 }
 0x247   :  { %1216 = vsyncpa [#allocation4 + $0x1], 1 }

</bundles_post_ra>
